<compile_context>
chip_gen: v7x
topology: tpu7x:2x2x1
jax: 0.10.0
libtpu: 0.0.40
codegen_flags: <defaults>
</compile_context>

<pallas_src>
import functools

import numpy as np
import jax
import jax.numpy as jnp
from jax import lax
from jax.experimental import pallas as pl
from jax.experimental.pallas import tpu as pltpu


def _round_up(x, m):
    return ((x + m - 1) // m) * m


def bbox_embed_kernel(idx_ref, table_ref, out_ref, *, chunk_spans):
    """idx_ref:  (TM, NL) int32 local per-table indices (-1 => contribute 0).
       table_ref:(K, Dp)  f32 concatenated per-table chunks (each 128-row padded).
       out_ref:  (TM, Dp) f32.
    """
    idx = idx_ref[...]                                   # (TM, NL)
    tm, dp = out_ref.shape

    acc = None
    off = 0
    for k, span in enumerate(chunk_spans):
        # One-hot restricted to this table's 128-row-padded chunk.  Index -1
        # never matches, so those lanes add exactly zero.
        iota = lax.broadcasted_iota(jnp.int32, (tm, span), 1)
        onehot = (iota == idx[:, k:k + 1]).astype(jnp.float32)   # (TM, span)
        contrib = jnp.dot(onehot, table_ref[pl.ds(off, span), :],
                          preferred_element_type=jnp.float32)     # (TM, Dp)
        acc = contrib if acc is None else acc + contrib
        off += span

    out_ref[...] = acc.astype(out_ref.dtype)


def bbox_embedding(boxes, input_box_counts, past_key_values_length, params,
                   *, row_tile=256):
    """boxes: (B, S, 4) int; input_box_counts: (B, 2) int; returns (B, S, D) f32."""
    B, S, _ = boxes.shape
    names = ("x1", "y1", "x2", "y2", "w", "h", "cx", "cy", "pos")
    sizes = [int(params[k].shape[0]) for k in names]
    D = int(params["x1"].shape[1])
    D_pad = _round_up(D, 128)

    # --- Concatenated table: each sub-table padded to a multiple of 128 rows.
    spans = tuple(_round_up(s, 128) for s in sizes)
    chunks = []
    for k, name in enumerate(names):
        t = params[name].astype(jnp.float32)
        chunks.append(jnp.pad(t, ((0, spans[k] - sizes[k]), (0, D_pad - D))))
    table = jnp.concatenate(chunks, axis=0)               # (K_total, D_pad)
    k_total = int(sum(spans))

    # --- Index packing (trivial int math; XLA fuses it for free) ------------
    boxes = boxes.astype(jnp.int32)
    x1, y1, x2, y2 = (boxes[..., i] for i in range(4))
    w = x2 - x1
    h = y2 - y1
    cx = (x1 + x2) // 2            # == .long() truncation for non-negative coords
    cy = (y1 + y2) // 2
    coords = (x1, y1, x2, y2, w, h, cx, cy)

    idx_list = []
    for k, c in enumerate(coords):
        valid = (c >= 0) & (c < sizes[k])                 # OOB coords contribute zero
        idx_list.append(jnp.where(valid, c, -1))

    if past_key_values_length == 0:
        counts = input_box_counts.astype(jnp.int32)
        start = counts[:, 0:1]                            # (B, 1)
        end = counts[:, 1:2] - 1                          # (B, 1)
        pos = jnp.arange(S, dtype=jnp.int32)[None, :]     # (1, S)
        rel = pos - start                                 # (B, S)
        # TODO(synk): windows longer than max_position_embeddings contribute
        # zero past that length (the PyTorch reference would raise instead).
        in_win = (pos >= start) & (pos < end) & (rel < sizes[8])
        pos_idx = jnp.where(in_win, rel, -1)
    else:
        pos_idx = jnp.full((B, S), -1, jnp.int32)
    idx_list.append(pos_idx)

    n_used = len(idx_list)                                # 9
    n_lanes = 16                                          # lane-pad index tensor
    idx = jnp.stack(idx_list, axis=-1).astype(jnp.int32)  # (B, S, 9)
    idx = jnp.concatenate(
        [idx, jnp.full((B, S, n_lanes - n_used), -1, jnp.int32)], axis=-1)
    idx = idx.reshape(B * S, n_lanes)

    # --- Row tiling ----------------------------------------------------------
    rows = B * S
    tm = min(row_tile, _round_up(rows, 8))
    rows_pad = _round_up(rows, tm)
    if rows_pad > rows:
        idx = jnp.concatenate(
            [idx, jnp.full((rows_pad - rows, n_lanes), -1, jnp.int32)], axis=0)

    out = pl.pallas_call(
        functools.partial(bbox_embed_kernel, chunk_spans=spans),
        out_shape=jax.ShapeDtypeStruct((rows_pad, D_pad), jnp.float32),
        grid_spec=pltpu.PrefetchScalarGridSpec(
            num_scalar_prefetch=0,
            grid=(rows_pad // tm,),
            in_specs=[
                pl.BlockSpec((tm, n_lanes), lambda i: (i, 0)),
                # Constant block index -> table stays VMEM-resident across steps.
                pl.BlockSpec((k_total, D_pad), lambda i: (0, 0)),
            ],
            out_specs=pl.BlockSpec((tm, D_pad), lambda i: (i, 0)),
        ),
        compiler_params=pltpu.CompilerParams(dimension_semantics=("parallel",)),
    )(idx, table)

    return out[:rows, :D].reshape(B, S, D)


def _reference(boxes, counts, past_len, params):
    boxes = np.asarray(boxes)
    x1, y1, x2, y2 = [boxes[..., i] for i in range(4)]
    w = x2 - x1
    h = y2 - y1
    cx = (x1 + x2) // 2
    cy = (y1 + y2) // 2
    p = {k: np.asarray(v) for k, v in params.items()}
    emb = (p["x1"][x1] + p["y1"][y1] + p["x2"][x2] + p["y2"][y2]
           + p["w"][w] + p["h"][h] + p["cx"][cx] + p["cy"][cy])
    if past_len == 0:
        counts = np.asarray(counts)
        for j in range(emb.shape[0]):
            s = int(counts[j, 0])
            e = int(counts[j, 1]) - 1
            emb[j, s:e] = emb[j, s:e] + p["pos"][: e - s]
    return emb


if __name__ == "__main__":
    # Small synthetic config consistent with the module's __init__.
    B, S, D = 2, 8, 128
    MAX_W, MAX_H, MAX_POS = 128, 96, 32

    key = jax.random.PRNGKey(0)
    keys = jax.random.split(key, 16)

    def tbl(k, rows):
        return (0.02 * jax.random.normal(k, (rows, D), jnp.float32)).astype(jnp.float32)

    params = {
        "x1": tbl(keys[0], MAX_W),
        "y1": tbl(keys[1], MAX_H),
        "x2": tbl(keys[2], MAX_W),
        "y2": tbl(keys[3], MAX_H),
        "w":  tbl(keys[4], MAX_W),
        "h":  tbl(keys[5], MAX_H),
        "cx": tbl(keys[6], MAX_W),
        "cy": tbl(keys[7], MAX_H),
        "pos": tbl(keys[8], MAX_POS),
    }

    # Valid boxes: x1 <= x2 < MAX_W, y1 <= y2 < MAX_H.
    x1 = jax.random.randint(keys[9], (B, S), 0, MAX_W // 2)
    x2 = x1 + jax.random.randint(keys[10], (B, S), 0, MAX_W // 2)
    y1 = jax.random.randint(keys[11], (B, S), 0, MAX_H // 2)
    y2 = y1 + jax.random.randint(keys[12], (B, S), 0, MAX_H // 2)
    boxes = jnp.stack([x1, y1, x2, y2], axis=-1).astype(jnp.int32)

    input_box_counts = jnp.array([[0, 6], [1, 8]], dtype=jnp.int32)
    past_key_values_length = 0

    out = bbox_embedding(boxes, input_box_counts, past_key_values_length, params)
    out = jax.block_until_ready(out)

    ref = _reference(boxes, input_box_counts, past_key_values_length, params)
    np.testing.assert_allclose(np.asarray(out), ref, rtol=1e-5, atol=1e-5)

    print("KERNEL_OK")
</pallas_src>

<mosaic_0001>
module attributes {stable_mosaic.version = 11 : i64} {
  func.func @bbox_embed_kernel(%arg0: i32, %arg1: memref<16x16xi32, #tpu.memory_space<vmem>>, %arg2: memref<1152x128xf32, #tpu.memory_space<vmem>>, %arg3: memref<16x128xf32, #tpu.memory_space<vmem>>) attributes {dimension_semantics = [#tpu.dimension_semantics<parallel>], iteration_bounds = array<i64: 1>, scalar_prefetch = 0 : i64, scratch_operands = 0 : i64, tpu.core_type = #tpu.core_type<tc>, window_params = [{transform_indices = @transform_0, window_bounds = array<i64: 16, 16>}, {pipeline_mode = #tpu.pipeline_mode<synchronous>, transform_indices = @transform_1, window_bounds = array<i64: 1152, 128>}, {transform_indices = @transform_2, window_bounds = array<i64: 16, 128>}]} {
    %c0 = arith.constant 0 : index
    %c0_0 = arith.constant 0 : index
    %0 = vector.load %arg1[%c0, %c0_0] : memref<16x16xi32, #tpu.memory_space<vmem>>, vector<16x16xi32>
    %1 = tpu.iota {dimensions = array<i32: 1>} : vector<16x128xi32>
    %2 = vector.extract_strided_slice %0 {offsets = [0, 0], sizes = [16, 1], strides = [1, 1]} : vector<16x16xi32> to vector<16x1xi32>
    %3 = vector.broadcast %2 : vector<16x1xi32> to vector<16x128xi32>
    %4 = arith.cmpi eq, %1, %3 : vector<16x128xi32>
    %5 = arith.extui %4 : vector<16x128xi1> to vector<16x128xi32>
    %6 = arith.sitofp %5 : vector<16x128xi32> to vector<16x128xf32>
    %c0_1 = arith.constant 0 : index
    %c0_2 = arith.constant 0 : index
    %7 = vector.load %arg2[%c0_1, %c0_2] : memref<1152x128xf32, #tpu.memory_space<vmem>>, vector<128x128xf32>
    %cst = arith.constant dense<0.000000e+00> : vector<16x128xf32>
    %8 = tpu.matmul %6, %7, %cst {dimension_numbers = #tpu.dot_dimension_numbers<[1], [0], [0], [1], [0, 0, 1, 1], [], []>} : vector<16x128xf32>, vector<128x128xf32>, vector<16x128xf32> -> vector<16x128xf32>
    %9 = tpu.iota {dimensions = array<i32: 1>} : vector<16x128xi32>
    %10 = vector.extract_strided_slice %0 {offsets = [0, 1], sizes = [16, 1], strides = [1, 1]} : vector<16x16xi32> to vector<16x1xi32>
    %11 = vector.broadcast %10 : vector<16x1xi32> to vector<16x128xi32>
    %12 = arith.cmpi eq, %9, %11 : vector<16x128xi32>
    %13 = arith.extui %12 : vector<16x128xi1> to vector<16x128xi32>
    %14 = arith.sitofp %13 : vector<16x128xi32> to vector<16x128xf32>
    %c128 = arith.constant 128 : index
    %c0_3 = arith.constant 0 : index
    %15 = vector.load %arg2[%c128, %c0_3] : memref<1152x128xf32, #tpu.memory_space<vmem>>, vector<128x128xf32>
    %cst_4 = arith.constant dense<0.000000e+00> : vector<16x128xf32>
    %16 = tpu.matmul %14, %15, %cst_4 {dimension_numbers = #tpu.dot_dimension_numbers<[1], [0], [0], [1], [0, 0, 1, 1], [], []>} : vector<16x128xf32>, vector<128x128xf32>, vector<16x128xf32> -> vector<16x128xf32>
    %17 = arith.addf %8, %16 : vector<16x128xf32>
    %18 = tpu.iota {dimensions = array<i32: 1>} : vector<16x128xi32>
    %19 = vector.extract_strided_slice %0 {offsets = [0, 2], sizes = [16, 1], strides = [1, 1]} : vector<16x16xi32> to vector<16x1xi32>
    %20 = vector.broadcast %19 : vector<16x1xi32> to vector<16x128xi32>
    %21 = arith.cmpi eq, %18, %20 : vector<16x128xi32>
    %22 = arith.extui %21 : vector<16x128xi1> to vector<16x128xi32>
    %23 = arith.sitofp %22 : vector<16x128xi32> to vector<16x128xf32>
    %c256 = arith.constant 256 : index
    %c0_5 = arith.constant 0 : index
    %24 = vector.load %arg2[%c256, %c0_5] : memref<1152x128xf32, #tpu.memory_space<vmem>>, vector<128x128xf32>
    %cst_6 = arith.constant dense<0.000000e+00> : vector<16x128xf32>
    %25 = tpu.matmul %23, %24, %cst_6 {dimension_numbers = #tpu.dot_dimension_numbers<[1], [0], [0], [1], [0, 0, 1, 1], [], []>} : vector<16x128xf32>, vector<128x128xf32>, vector<16x128xf32> -> vector<16x128xf32>
    %26 = arith.addf %17, %25 : vector<16x128xf32>
    %27 = tpu.iota {dimensions = array<i32: 1>} : vector<16x128xi32>
    %28 = vector.extract_strided_slice %0 {offsets = [0, 3], sizes = [16, 1], strides = [1, 1]} : vector<16x16xi32> to vector<16x1xi32>
    %29 = vector.broadcast %28 : vector<16x1xi32> to vector<16x128xi32>
    %30 = arith.cmpi eq, %27, %29 : vector<16x128xi32>
    %31 = arith.extui %30 : vector<16x128xi1> to vector<16x128xi32>
    %32 = arith.sitofp %31 : vector<16x128xi32> to vector<16x128xf32>
    %c384 = arith.constant 384 : index
    %c0_7 = arith.constant 0 : index
    %33 = vector.load %arg2[%c384, %c0_7] : memref<1152x128xf32, #tpu.memory_space<vmem>>, vector<128x128xf32>
    %cst_8 = arith.constant dense<0.000000e+00> : vector<16x128xf32>
    %34 = tpu.matmul %32, %33, %cst_8 {dimension_numbers = #tpu.dot_dimension_numbers<[1], [0], [0], [1], [0, 0, 1, 1], [], []>} : vector<16x128xf32>, vector<128x128xf32>, vector<16x128xf32> -> vector<16x128xf32>
    %35 = arith.addf %26, %34 : vector<16x128xf32>
    %36 = tpu.iota {dimensions = array<i32: 1>} : vector<16x128xi32>
    %37 = vector.extract_strided_slice %0 {offsets = [0, 4], sizes = [16, 1], strides = [1, 1]} : vector<16x16xi32> to vector<16x1xi32>
    %38 = vector.broadcast %37 : vector<16x1xi32> to vector<16x128xi32>
    %39 = arith.cmpi eq, %36, %38 : vector<16x128xi32>
    %40 = arith.extui %39 : vector<16x128xi1> to vector<16x128xi32>
    %41 = arith.sitofp %40 : vector<16x128xi32> to vector<16x128xf32>
    %c512 = arith.constant 512 : index
    %c0_9 = arith.constant 0 : index
    %42 = vector.load %arg2[%c512, %c0_9] : memref<1152x128xf32, #tpu.memory_space<vmem>>, vector<128x128xf32>
    %cst_10 = arith.constant dense<0.000000e+00> : vector<16x128xf32>
    %43 = tpu.matmul %41, %42, %cst_10 {dimension_numbers = #tpu.dot_dimension_numbers<[1], [0], [0], [1], [0, 0, 1, 1], [], []>} : vector<16x128xf32>, vector<128x128xf32>, vector<16x128xf32> -> vector<16x128xf32>
    %44 = arith.addf %35, %43 : vector<16x128xf32>
    %45 = tpu.iota {dimensions = array<i32: 1>} : vector<16x128xi32>
    %46 = vector.extract_strided_slice %0 {offsets = [0, 5], sizes = [16, 1], strides = [1, 1]} : vector<16x16xi32> to vector<16x1xi32>
    %47 = vector.broadcast %46 : vector<16x1xi32> to vector<16x128xi32>
    %48 = arith.cmpi eq, %45, %47 : vector<16x128xi32>
    %49 = arith.extui %48 : vector<16x128xi1> to vector<16x128xi32>
    %50 = arith.sitofp %49 : vector<16x128xi32> to vector<16x128xf32>
    %c640 = arith.constant 640 : index
    %c0_11 = arith.constant 0 : index
    %51 = vector.load %arg2[%c640, %c0_11] : memref<1152x128xf32, #tpu.memory_space<vmem>>, vector<128x128xf32>
    %cst_12 = arith.constant dense<0.000000e+00> : vector<16x128xf32>
    %52 = tpu.matmul %50, %51, %cst_12 {dimension_numbers = #tpu.dot_dimension_numbers<[1], [0], [0], [1], [0, 0, 1, 1], [], []>} : vector<16x128xf32>, vector<128x128xf32>, vector<16x128xf32> -> vector<16x128xf32>
    %53 = arith.addf %44, %52 : vector<16x128xf32>
    %54 = tpu.iota {dimensions = array<i32: 1>} : vector<16x128xi32>
    %55 = vector.extract_strided_slice %0 {offsets = [0, 6], sizes = [16, 1], strides = [1, 1]} : vector<16x16xi32> to vector<16x1xi32>
    %56 = vector.broadcast %55 : vector<16x1xi32> to vector<16x128xi32>
    %57 = arith.cmpi eq, %54, %56 : vector<16x128xi32>
    %58 = arith.extui %57 : vector<16x128xi1> to vector<16x128xi32>
    %59 = arith.sitofp %58 : vector<16x128xi32> to vector<16x128xf32>
    %c768 = arith.constant 768 : index
    %c0_13 = arith.constant 0 : index
    %60 = vector.load %arg2[%c768, %c0_13] : memref<1152x128xf32, #tpu.memory_space<vmem>>, vector<128x128xf32>
    %cst_14 = arith.constant dense<0.000000e+00> : vector<16x128xf32>
    %61 = tpu.matmul %59, %60, %cst_14 {dimension_numbers = #tpu.dot_dimension_numbers<[1], [0], [0], [1], [0, 0, 1, 1], [], []>} : vector<16x128xf32>, vector<128x128xf32>, vector<16x128xf32> -> vector<16x128xf32>
    %62 = arith.addf %53, %61 : vector<16x128xf32>
    %63 = tpu.iota {dimensions = array<i32: 1>} : vector<16x128xi32>
    %64 = vector.extract_strided_slice %0 {offsets = [0, 7], sizes = [16, 1], strides = [1, 1]} : vector<16x16xi32> to vector<16x1xi32>
    %65 = vector.broadcast %64 : vector<16x1xi32> to vector<16x128xi32>
    %66 = arith.cmpi eq, %63, %65 : vector<16x128xi32>
    %67 = arith.extui %66 : vector<16x128xi1> to vector<16x128xi32>
    %68 = arith.sitofp %67 : vector<16x128xi32> to vector<16x128xf32>
    %c896 = arith.constant 896 : index
    %c0_15 = arith.constant 0 : index
    %69 = vector.load %arg2[%c896, %c0_15] : memref<1152x128xf32, #tpu.memory_space<vmem>>, vector<128x128xf32>
    %cst_16 = arith.constant dense<0.000000e+00> : vector<16x128xf32>
    %70 = tpu.matmul %68, %69, %cst_16 {dimension_numbers = #tpu.dot_dimension_numbers<[1], [0], [0], [1], [0, 0, 1, 1], [], []>} : vector<16x128xf32>, vector<128x128xf32>, vector<16x128xf32> -> vector<16x128xf32>
    %71 = arith.addf %62, %70 : vector<16x128xf32>
    %72 = tpu.iota {dimensions = array<i32: 1>} : vector<16x128xi32>
    %73 = vector.extract_strided_slice %0 {offsets = [0, 8], sizes = [16, 1], strides = [1, 1]} : vector<16x16xi32> to vector<16x1xi32>
    %74 = vector.broadcast %73 : vector<16x1xi32> to vector<16x128xi32>
    %75 = arith.cmpi eq, %72, %74 : vector<16x128xi32>
    %76 = arith.extui %75 : vector<16x128xi1> to vector<16x128xi32>
    %77 = arith.sitofp %76 : vector<16x128xi32> to vector<16x128xf32>
    %c1024 = arith.constant 1024 : index
    %c0_17 = arith.constant 0 : index
    %78 = vector.load %arg2[%c1024, %c0_17] : memref<1152x128xf32, #tpu.memory_space<vmem>>, vector<128x128xf32>
    %cst_18 = arith.constant dense<0.000000e+00> : vector<16x128xf32>
    %79 = tpu.matmul %77, %78, %cst_18 {dimension_numbers = #tpu.dot_dimension_numbers<[1], [0], [0], [1], [0, 0, 1, 1], [], []>} : vector<16x128xf32>, vector<128x128xf32>, vector<16x128xf32> -> vector<16x128xf32>
    %80 = arith.addf %71, %79 : vector<16x128xf32>
    %c0_19 = arith.constant 0 : index
    %c0_20 = arith.constant 0 : index
    %81 = vector.load %arg3[%c0_19, %c0_20] : memref<16x128xf32, #tpu.memory_space<vmem>>, vector<16x128xf32>
    tpu.vector_store %arg3[%c0_19, %c0_20], %80 {strides = array<i32>} : memref<16x128xf32, #tpu.memory_space<vmem>>, vector<16x128xf32>,
    return
  }
  func.func @transform_0(%arg0: i32) -> (i32, i32) {
    %c0_i32 = arith.constant 0 : i32
    %c0_i32_0 = arith.constant 0 : i32
    return %arg0, %c0_i32 : i32, i32
  }
  func.func @transform_1(%arg0: i32) -> (i32, i32) {
    %c0_i32 = arith.constant 0 : i32
    %c0_i32_0 = arith.constant 0 : i32
    %c0_i32_1 = arith.constant 0 : i32
    return %c0_i32, %c0_i32_0 : i32, i32
  }
  func.func @transform_2(%arg0: i32) -> (i32, i32) {
    %c0_i32 = arith.constant 0 : i32
    %c0_i32_0 = arith.constant 0 : i32
    return %arg0, %c0_i32 : i32, i32
  }
}

</mosaic_0001>

<bundles_post_ra>
// kernel: tpu_custom_call.1
= control target key start
LH: loop header
LB: loop body
LE: loop exit
PB: predicated region body
PF: predicated region fallthrough
CT: control target
= control target key end

     0   :  { %7 = vsyncpa [#allocation3], 0  ;;  %s2062_s0 = inlined_call_operand.hbm [shape: s32[16,16], index: 0, kind: input, shape index: {}]   ;;  %s2063_s1 = inlined_call_operand.hbm [shape: f32[1152,128], index: 1, kind: input, shape index: {}]   ;;  %s2064_s2 = inlined_call_operand.hbm [shape: f32[16,128], index: 2, kind: output, shape index: {}]  }
   0x1   :  { %8 = vsyncpa [#allocation6], 0 }
   0x2   :  { %9 = vsyncpa [#allocation4], 0  ;;  %s1924_s9 = smov [#allocation2]   ;;  %s1852_s13 = scalar_lea.hbm %s2062_s0, 256 }
   0x3   :  { %s15_s10 = sshll.u32 %s1924_s9, 4  ;;  %p1853_p0 = scmp.ne.s32.totalorder %s2062_s0, %s1852_s13  ;;  %s16_s10 = int_to_ptr.vmem [resolvable:$true] %s15_s10 }
   0x4   :  { %p1856_p1 = scmp.lt.u32.totalorder %s1852_s13, %s2062_s0 }
   0x6   :  { %p1858_p2 = pnand %p1856_p1, %p1853_p0 }
   0x8   :  { %1861 = shalt.err (!%p1858_p2)
}
   0x9   :  { %s1862_s18 = scalar_lea.vmem %s16_s10, 256  ;;  %p1867_p4 = scmp.lt.s32.totalorder %s16_s10, %s16_s10 }
   0xa   :  { %p1863_p3 = scmp.ne.s32.totalorder %s16_s10, %s1862_s18  ;;  %p1868_p5 = scmp.lt.s32.totalorder %s1862_s18, %s1862_s18 }
   0xc   :  { %p1869_p6 = por %p1868_p5, %p1867_p4 }
   0xe   :  { %p1870_p7 = pnand %p1869_p6, %p1863_p3 }
  0x10   :  { %1873 = shalt.err (!%p1870_p7)
}
  0x11   :  { %s1925_s19 = smov 128   ;;  %s1926_s20 = smov 8  }
  0x12   :  { %21 = dma.hbm_to_vmem [thread:$0]  %s2062_s0, 256, %s16_s10, [#allocation3], %s1925_s19, %s1925_s19, %s1926_s20  }
  0x13   :  { %s1927_s23 = smov [#allocation5]   ;;  %s1874_s27 = scalar_lea.hbm %s2063_s1, 18432 }
  0x14   :  { %s27_s24 = sshll.u32 %s1927_s23, 4  ;;  %p1875_p8 = scmp.ne.s32.totalorder %s2063_s1, %s1874_s27  ;;  %s28_s24 = int_to_ptr.vmem [resolvable:$true] %s27_s24 }
  0x15   :  { %p1878_p9 = scmp.lt.u32.totalorder %s1874_s27, %s2063_s1 }
  0x17   :  { %p1880_p10 = pnand %p1878_p9, %p1875_p8 }
  0x19   :  { %1883 = shalt.err (!%p1880_p10)
}
  0x1a   :  { %s1884_s4 = scalar_lea.vmem %s28_s24, 18432  ;;  %p1889_p12 = scmp.lt.s32.totalorder %s28_s24, %s28_s24 }
  0x1b   :  { %p1885_p11 = scmp.ne.s32.totalorder %s28_s24, %s1884_s4  ;;  %p1890_p13 = scmp.lt.s32.totalorder %s1884_s4, %s1884_s4 }
  0x1d   :  { %p1891_p0 = por %p1890_p13, %p1889_p12 }
  0x1f   :  { %p1892_p1 = pnand %p1891_p0, %p1885_p11 }
  0x21   :  { %1895 = shalt.err (!%p1892_p1)
}
  0x22   :  { %33 = dma.hbm_to_vmem [thread:$0]  %s2063_s1, 18432, %s28_s24, [#allocation6], %s1925_s19, %s1925_s19, %s1926_s20  }
  0x23   :  { %1918 = dma.done.wait [#allocation3], 256  }
  0x24   :  { %1919 = vsyncadd [#allocation3], 4294967040 }
  0x25   :  { %1920 = dma.done.wait [#allocation6], 18432  }
  0x26   :  { %1921 = vsyncadd [#allocation6], 4294948864  ;;  %v1928_v0 = vmov 4   ;;  %v1929_v1 = vmov 1   ;;  %v1984_v2 = vld [vmem:[#allocation2] sm:$0xff]  ;;  %v472_v3 = vld [vmem:[#allocation5 + $0x200] sm:$0xff] }
  0x27   :  { %1837 = vset.pattern.permute.xlu0 %v1928_v0  ;;  %1838 = vset.pattern.permute.xlu1 %v1929_v1  ;;  %v473_v4 = vld [vmem:[#allocation5 + $0x208] sm:$0xff]  ;;  %v474_v5 = vld [vmem:[#allocation5 + $0x210] sm:$0xff]  ;;  %v475_v6 = vld [vmem:[#allocation5 + $0x218] sm:$0xff]  ;;  %v1930_v15 = vmov 5   ;;  %v1931_v29 = vmov 0   ;;  %v1932_v30 = vmov 6  }
  0x28   :  { %461 = vperm.xlu0 %1837, %v1984_v2   ;;  %73 = vperm.xlu1 %1838, %v1984_v2   ;;  %v1988_v7 = vld [vmem:[#allocation2 + $0x8] sm:$0xff]  ;;  %v1646_v8 = vpack.c.bf16 %v473_v4, %v472_v3  ;;  %v84_v9 = vld [vmem:[#allocation5 + $0x80] sm:$0xff]  ;;  %v85_v10 = vld [vmem:[#allocation5 + $0x88] sm:$0xff]  ;;  %v1650_v11 = vpack.c.bf16 %v475_v6, %v474_v5  ;;  %v1933_v37 = vmov 2   ;;  %v1934_v44 = vmov 7   ;;  %s1938_s1 = smov [#allocation7]  }
  0x29   :  { %v1518_v12 = vpack.c.bf16 %v85_v10, %v84_v9  ;;  %v86_v13 = vld [vmem:[#allocation5 + $0x90] sm:$0xff]  ;;  %v87_v14 = vld [vmem:[#allocation5 + $0x98] sm:$0xff]  ;;  %v476_v16 = vld [vmem:[#allocation5 + $0x220] sm:$0xff]  ;;  %v1935_v53 = vmov 3   ;;  %v1936_v63 = vmov 8   ;;  %v1937_v9 = vmov 1.0  }
  0x2a   :  { %1647 = vmatprep.subr.bf16.mxu0 %v1646_v8  ;;  %v477_v17 = vld [vmem:[#allocation5 + $0x228] sm:$0xff]  ;;  %v1522_v18 = vpack.c.bf16 %v87_v14, %v86_v13  ;;  %v88_v19 = vld [vmem:[#allocation5 + $0xa0] sm:$0xff]  ;;  %v478_v22 = vld [vmem:[#allocation5 + $0x230] sm:$0xff]  ;;  %s992_s6 = sshll.u32 %s1938_s1, 4  ;;  %s993_s6 = int_to_ptr.vmem [resolvable:$true] %s992_s6 }
  0x2b   :  { %1649 = vmatpush3.bf16.msra.mxu0 %v1646_v8  ;;  %v89_v20 = vld [vmem:[#allocation5 + $0xa8] sm:$0xff]  ;;  %1519 = vmatprep.subr.bf16.mxu1 %v1518_v12  ;;  %v1654_v21 = vpack.c.bf16 %v477_v17, %v476_v16  ;;  %v479_v24 = vld [vmem:[#allocation5 + $0x238] sm:$0xff]  ;;  %v90_v25 = vld [vmem:[#allocation5 + $0xb0] sm:$0xff]  ;;  %s1896_s7 = scalar_lea.vmem %s993_s6, 256  ;;  %p1901_p3 = scmp.lt.s32.totalorder %s993_s6, %s993_s6 }
  0x2c   :  { %464 = vperm.xlu0 %1837, %v1988_v7   ;;  %1839 = vset.pattern.permute.xlu1 %v1930_v15  ;;  %v1526_v23 = vpack.c.bf16 %v89_v20, %v88_v19  ;;  %v91_v26 = vld [vmem:[#allocation5 + $0xb8] sm:$0xff]  ;;  %v1658_v27 = vpack.c.bf16 %v479_v24, %v478_v22  ;;  %v480_v31 = vld [vmem:[#allocation5 + $0x240] sm:$0xff]  ;;  %v481_v32 = vld [vmem:[#allocation5 + $0x248] sm:$0xff]  ;;  %p1897_p2 = scmp.ne.s32.totalorder %s993_s6, %s1896_s7  ;;  %p1902_p4 = scmp.lt.s32.totalorder %s1896_s7, %s1896_s7 }
  0x2d   :  { %566 = vperm.xlu1 %1839, %v1984_v2   ;;  %1651 = vmatprep.subr.bf16.mxu0 %v1650_v11  ;;  %v1530_v28 = vpack.c.bf16 %v91_v26, %v90_v25  ;;  %v92_v33 = vld [vmem:[#allocation5 + $0xc0] sm:$0xff]  ;;  %v93_v34 = vld [vmem:[#allocation5 + $0xc8] sm:$0xff]  ;;  %v1662_v35 = vpack.c.bf16 %v481_v32, %v480_v31  ;;  %v482_v38 = vld [vmem:[#allocation5 + $0x250] sm:$0xff] }
  0x2e   :  { %1521 = vmatpush3.bf16.msra.mxu1 %v1518_v12  ;;  %v1534_v36 = vpack.c.bf16 %v93_v34, %v92_v33  ;;  %v483_v39 = vld [vmem:[#allocation5 + $0x258] sm:$0xff]  ;;  %v94_v40 = vld [vmem:[#allocation5 + $0xd0] sm:$0xff]  ;;  %v484_v45 = vld [vmem:[#allocation5 + $0x260] sm:$0xff]  ;;  %p1903_p5 = por %p1902_p4, %p1901_p3 }
  0x2f   :  { %1523 = vmatprep.subr.bf16.mxu1 %v1522_v18  ;;  %1653 = vmatpush3.bf16.msra.mxu0 %v1650_v11  ;;  %v95_v41 = vld [vmem:[#allocation5 + $0xd8] sm:$0xff]  ;;  %v1666_v42 = vpack.c.bf16 %v483_v39, %v482_v38  ;;  %v485_v46 = vld [vmem:[#allocation5 + $0x268] sm:$0xff]  ;;  %v96_v47 = vld [vmem:[#allocation5 + $0xe0] sm:$0xff] }
  0x30   :  { %1840 = vset.pattern.permute.xlu0 %v1929_v1  ;;  %1655 = vmatprep.subr.bf16.mxu0 %v1654_v21  ;;  %v1538_v43 = vpack.c.bf16 %v95_v41, %v94_v40  ;;  %v97_v48 = vld [vmem:[#allocation5 + $0xe8] sm:$0xff]  ;;  %v1670_v49 = vpack.c.bf16 %v485_v46, %v484_v45  ;;  %v486_v50 = vld [vmem:[#allocation5 + $0x270] sm:$0xff]  ;;  %v487_v51 = vld [vmem:[#allocation5 + $0x278] sm:$0xff]  ;;  %v42_v1 = vlaneseq  ;;  %p1904_p6 = pnand %p1903_p5, %p1897_p2 }
  0x31   :  { %76 = vperm.xlu0 %1840, %v1988_v7   ;;  %569 = vperm.xlu1 %1839, %v1988_v7   ;;  %v1542_v52 = vpack.c.bf16 %v97_v48, %v96_v47  ;;  %v98_v54 = vld [vmem:[#allocation5 + $0xf0] sm:$0xff]  ;;  %v99_v55 = vld [vmem:[#allocation5 + $0xf8] sm:$0xff]  ;;  %v1674_v56 = vpack.c.bf16 %v487_v51, %v486_v50  ;;  %v577_v57 = vld [vmem:[#allocation5 + $0x280] sm:$0xff] }
  0x32   :  { %1525 = vmatpush3.bf16.msra.mxu1 %v1522_v18  ;;  %v578_v58 = vld [vmem:[#allocation5 + $0x288] sm:$0xff]  ;;  %v1546_v59 = vpack.c.bf16 %v99_v55, %v98_v54  ;;  %v56_v60 = vld [vmem:[#allocation5] sm:$0xff]  ;;  %v2006_v3 = vand.u32 127, %v42_v1  ;;  %v579_v6 = vld [vmem:[#allocation5 + $0x290] sm:$0xff] }
  0x33   :  { %1527 = vmatprep.subr.bf16.mxu1 %v1526_v23  ;;  %1657 = vmatpush3.bf16.msra.mxu0 %v1654_v21  ;;  %v57_v61 = vld [vmem:[#allocation5 + $0x8] sm:$0xff]  ;;  %v1678_v62 = vpack.c.bf16 %v578_v58, %v577_v57  ;;  %v580_v8 = vld [vmem:[#allocation5 + $0x298] sm:$0xff]  ;;  %v58_v13 = vld [vmem:[#allocation5 + $0x10] sm:$0xff] }
  0x34   :  { %1659 = vmatprep.subr.bf16.mxu0 %v1658_v27  ;;  %v1550_v0 = vpack.c.bf16 %v57_v61, %v56_v60  ;;  %v582_v11 = vld [vmem:[#allocation5 + $0x2a8] sm:$0xff]  ;;  %v59_v14 = vld [vmem:[#allocation5 + $0x18] sm:$0xff]  ;;  %v583_v18 = vld [vmem:[#allocation5 + $0x2b0] sm:$0xff] }
  0x35   :  { %1841 = vset.pattern.permute.xlu1 %v1931_v29  ;;  %1842 = vset.pattern.permute.xlu0 %v1932_v30  ;;  %v1554_v17 = vpack.c.bf16 %v59_v14, %v58_v13  ;;  %v584_v19 = vld [vmem:[#allocation5 + $0x2b8] sm:$0xff]  ;;  %v60_v21 = vld [vmem:[#allocation5 + $0x20] sm:$0xff]  ;;  %v61_v22 = vld [vmem:[#allocation5 + $0x28] sm:$0xff] }
  0x36   :  { %45 = vperm.xlu1 %1841, %v1984_v2   ;;  %671 = vperm.xlu0 %1842, %v1984_v2   ;;  %v1558_v24 = vpack.c.bf16 %v61_v22, %v60_v21  ;;  %v585_v25 = vld [vmem:[#allocation5 + $0x2c0] sm:$0xff]  ;;  %v586_v26 = vld [vmem:[#allocation5 + $0x2c8] sm:$0xff]  ;;  %v587_v32 = vld [vmem:[#allocation5 + $0x2d0] sm:$0xff] }
  0x37   :  { %1529 = vmatpush3.bf16.msra.mxu1 %v1526_v23  ;;  %1661 = vmatpush3.bf16.msra.mxu0 %v1658_v27  ;;  %v1690_v23 = vpack.c.bf16 %v584_v19, %v583_v18  ;;  %v62_v27 = vld [vmem:[#allocation5 + $0x30] sm:$0xff]  ;;  %v588_v33 = vld [vmem:[#allocation5 + $0x2d8] sm:$0xff]  ;;  %v64_v34 = vld [vmem:[#allocation5 + $0x40] sm:$0xff] }
  0x38   :  { %1531 = vmatprep.subr.bf16.mxu1 %v1530_v28  ;;  %1663 = vmatprep.subr.bf16.mxu0 %v1662_v35  ;;  %v589_v38 = vld [vmem:[#allocation5 + $0x2e0] sm:$0xff]  ;;  %v590_v39 = vld [vmem:[#allocation5 + $0x2e8] sm:$0xff]  ;;  %v66_v40 = vld [vmem:[#allocation5 + $0x50] sm:$0xff] }
  0x39   :  { %v67_v41 = vld [vmem:[#allocation5 + $0x58] sm:$0xff]  ;;  %v68_v46 = vld [vmem:[#allocation5 + $0x60] sm:$0xff]  ;;  %v69_v47 = vld [vmem:[#allocation5 + $0x68] sm:$0xff] }
  0x3a   :  { %48 = vperm.xlu1 %1841, %v1988_v7   ;;  %1844 = vset.pattern.permute.xlu0 %v1933_v37  ;;  %v592_v45 = vld [vmem:[#allocation5 + $0x2f8] sm:$0xff]  ;;  %v682_v50 = vld [vmem:[#allocation5 + $0x300] sm:$0xff]  ;;  %v683_v51 = vld [vmem:[#allocation5 + $0x308] sm:$0xff] }
  0x3b   :  { %251 = vperm.xlu0 %1844, %v1984_v2   ;;  %1533 = vmatpush3.bf16.msra.mxu1 %v1530_v28  ;;  %v63_v28 = vld [vmem:[#allocation5 + $0x38] sm:$0xff]  ;;  %v1710_v54 = vpack.c.bf16 %v683_v51, %v682_v50  ;;  %v263_v60 = vld [vmem:[#allocation5 + $0x108] sm:$0xff]  ;;  %v692_v21 = vld [vmem:[#allocation5 + $0x350] sm:$0xff] }
  0x3c   :  { %1535 = vmatprep.subr.bf16.mxu1 %v1534_v36  ;;  %1665 = vmatpush3.bf16.msra.mxu0 %v1662_v35  ;;  %v1562_v31 = vpack.c.bf16 %v63_v28, %v62_v27  ;;  %v65_v35 = vld [vmem:[#allocation5 + $0x48] sm:$0xff]  ;;  %v685_v57 = vld [vmem:[#allocation5 + $0x318] sm:$0xff]  ;;  %v694_v27 = vld [vmem:[#allocation5 + $0x360] sm:$0xff] }
  0x3d   :  { %1667 = vmatprep.subr.bf16.mxu0 %v1666_v42  ;;  %v687_v1 = vld [vmem:[#allocation5 + $0x328] sm:$0xff]  ;;  %v269_v18 = vld [vmem:[#allocation5 + $0x138] sm:$0xff] }
  0x3e   :  { %1843 = vset.pattern.permute.xlu1 %v1932_v30  ;;  %v1694_v30 = vpack.c.bf16 %v586_v26, %v585_v25  ;;  %v693_v22 = vld [vmem:[#allocation5 + $0x358] sm:$0xff]  ;;  %v695_v28 = vld [vmem:[#allocation5 + $0x368] sm:$0xff] }
  0x3f   :  { %674 = vperm.xlu1 %1843, %v1988_v7   ;;  %1847 = vset.pattern.permute.xlu0 %v1934_v44  ;;  %v1730_v25 = vpack.c.bf16 %v693_v22, %v692_v21  ;;  %v368_v50 = vld [vmem:[#allocation5 + $0x188] sm:$0xff] }
  0x40   :  { %779 = vperm.xlu0 %1847, %v1988_v7   ;;  %1537 = vmatpush3.bf16.msra.mxu1 %v1534_v36  ;;  %v1698_v36 = vpack.c.bf16 %v588_v33, %v587_v32  ;;  %v1734_v32 = vpack.c.bf16 %v695_v28, %v694_v27 }
  0x41   :  { %1539 = vmatprep.subr.bf16.mxu1 %v1538_v43  ;;  %1669 = vmatpush3.bf16.msra.mxu0 %v1666_v42  ;;  %v1702_v42 = vpack.c.bf16 %v590_v39, %v589_v38 }
  0x42   :  { %1671 = vmatprep.subr.bf16.mxu0 %v1670_v49 }
  0x43   :  { %1845 = vset.pattern.permute.xlu1 %v1934_v44  ;;  %v591_v44 = vld [vmem:[#allocation5 + $0x2f0] sm:$0xff] }
  0x44   :  { %776 = vperm.xlu1 %1845, %v1984_v2   ;;  %1850 = vset.pattern.permute.xlu0 %v1935_v53  ;;  %v1706_v48 = vpack.c.bf16 %v592_v45, %v591_v44  ;;  %v277_v44 = vld [vmem:[#allocation5 + $0x178] sm:$0xff] }
  0x45   :  { %359 = vperm.xlu0 %1850, %v1988_v7   ;;  %1541 = vmatpush3.bf16.msra.mxu1 %v1538_v43  ;;  %v1570_v43 = vpack.c.bf16 %v67_v41, %v66_v40  ;;  %v787_v41 = vld [vmem:[#allocation5 + $0x380] sm:$0xff] }
  0x46   :  { %1543 = vmatprep.subr.bf16.mxu1 %v1542_v52  ;;  %1673 = vmatpush3.bf16.msra.mxu0 %v1670_v49  ;;  %v1574_v49 = vpack.c.bf16 %v69_v47, %v68_v46  ;;  %v789_v47 = vld [vmem:[#allocation5 + $0x390] sm:$0xff] }
  0x47   :  { %1675 = vmatprep.subr.bf16.mxu0 %v1674_v56 }
  0x48   :  { %1846 = vset.pattern.permute.xlu1 %v1933_v37  ;;  %v1566_v37 = vpack.c.bf16 %v65_v35, %v64_v34  ;;  %v696_v34 = vld [vmem:[#allocation5 + $0x370] sm:$0xff]  ;;  %v697_v35 = vld [vmem:[#allocation5 + $0x378] sm:$0xff] }
  0x49   :  { %254 = vperm.xlu1 %1846, %v1988_v7   ;;  %1545 = vmatpush3.bf16.msra.mxu1 %v1542_v52  ;;  %v70_v52 = vld [vmem:[#allocation5 + $0x70] sm:$0xff]  ;;  %v1738_v38 = vpack.c.bf16 %v697_v35, %v696_v34 }
  0x4a   :  { %1547 = vmatprep.subr.bf16.mxu1 %v1546_v59  ;;  %1851 = vset.pattern.permute.xlu0 %v1936_v63 }
  0x4b   :  { %1677 = vmatpush3.bf16.msra.mxu0 %v1674_v56  ;;  %v684_v56 = vld [vmem:[#allocation5 + $0x310] sm:$0xff] }
  0x4c   :  { %1679 = vmatprep.subr.bf16.mxu0 %v1678_v62  ;;  %v1714_v61 = vpack.c.bf16 %v685_v57, %v684_v56  ;;  %v369_v56 = vld [vmem:[#allocation5 + $0x190] sm:$0xff]  ;;  %v370_v57 = vld [vmem:[#allocation5 + $0x198] sm:$0xff] }
  0x4d   :  { %1848 = vset.pattern.permute.xlu1 %v1935_v53  ;;  %1549 = vmatpush3.bf16.msra.mxu1 %v1546_v59  ;;  %v71_v53 = vld [vmem:[#allocation5 + $0x78] sm:$0xff]  ;;  %v262_v59 = vld [vmem:[#allocation5 + $0x100] sm:$0xff] }
  0x4e   :  { %356 = vperm.xlu1 %1848, %v1984_v2   ;;  %1551 = vmatprep.subr.bf16.mxu1 %v1550_v0  ;;  %v1578_v55 = vpack.c.bf16 %v71_v53, %v70_v52 }
  0x52   :  { %1849 = vset.pattern.permute.xlu1 %v1936_v63  ;;  %v1582_v63 = vpack.c.bf16 %v263_v60, %v262_v59  ;;  %v1618_v60 = vpack.c.bf16 %v370_v57, %v369_v56  ;;  %v906_v56 = vld [vmem:[#allocation5 + $0x470] sm:$0xff]  ;;  %v907_v57 = vld [vmem:[#allocation5 + $0x478] sm:$0xff] }
  0x53   :  { %881 = vperm.xlu1 %1849, %v1984_v2   ;;  %v1682_v2 = vpack.c.bf16 %v580_v8, %v579_v6 }
  0x57   :  { %884 = vperm.xlu1 %1849, %v1988_v7   ;;  %v581_v7 = vld [vmem:[#allocation5 + $0x2a0] sm:$0xff] }
  0x58   :  { %v1686_v15 = vpack.c.bf16 %v582_v11, %v581_v7  ;;  %v689_v7 = vld [vmem:[#allocation5 + $0x338] sm:$0xff]  ;;  %v266_v11 = vld [vmem:[#allocation5 + $0x120] sm:$0xff] }
  0xa7   :  { %v462_v4 = vpop.permute.xlu0 %461  ;;  %v74_v5 = vpop.permute.xlu1 %73 }
  0xa8   :  { %vm466_vm0 = vcmp.eq.s32.totalorder %v2006_v3, %v462_v4  ;;  %vm78_vm1 = vcmp.eq.s32.totalorder %v2006_v3, %v74_v5  ;;  %v264_v4 = vld [vmem:[#allocation5 + $0x110] sm:$0xff]  ;;  %v265_v5 = vld [vmem:[#allocation5 + $0x118] sm:$0xff] }
  0xa9   :  { %1375 = vmatprep.mubr.msk.f32.mxu0 %vm466_vm0, %v1937_v9  ;;  %1235 = vmatprep.mubr.msk.f32.mxu1 %vm78_vm1, %v1937_v9 }
  0xab   :  { %v465_v10 = vpop.permute.xlu0 %464 }
  0xac   :  { %vm467_vm2 = vcmp.eq.s32.totalorder %v2006_v3, %v465_v10  ;;  %v567_v12 = vpop.permute.xlu1 %566  ;;  %v1586_v10 = vpack.c.bf16 %v265_v5, %v264_v4  ;;  %v795_v5 = vld [vmem:[#allocation5 + $0x3c0] sm:$0xff] }
  0xad   :  { %1376 = vmatmul.mubr.msk.f32.vlgmr.msra.gmra.mrb[0].mxu0 %vm467_vm2, %v1937_v9  ;;  %vm571_vm3 = vcmp.eq.s32.totalorder %v2006_v3, %v567_v12  ;;  %v267_v12 = vld [vmem:[#allocation5 + $0x128] sm:$0xff] }
  0xae   :  { %1681 = vmatpush3.bf16.msra.mxu0 %v1678_v62  ;;  %1410 = vmatprep.mubr.msk.f32.mxu0 %vm571_vm3, %v1937_v9  ;;  %v1590_v14 = vpack.c.bf16 %v267_v12, %v266_v11  ;;  %v797_v11 = vld [vmem:[#allocation5 + $0x3d0] sm:$0xff]  ;;  %v798_v12 = vld [vmem:[#allocation5 + $0x3d8] sm:$0xff] }
  0xaf   :  { %1683 = vmatprep.subr.bf16.mxu0 %v1682_v2 }
  0xb0   :  { %v77_v16 = vpop.permute.xlu0 %76  ;;  %v2016_v20 = vpop.permute.xlu1 %569 }
  0xb1   :  { %vm79_vm4 = vcmp.eq.s32.totalorder %v2006_v3, %v77_v16  ;;  %vm572_vm7 = vcmp.eq.s32.totalorder %v2006_v3, %v2016_v20  ;;  %v691_v16 = vld [vmem:[#allocation5 + $0x348] sm:$0xff] }
  0xb2   :  { %1685 = vmatpush3.bf16.msra.mxu0 %v1682_v2  ;;  %1236 = vmatmul.mubr.msk.f32.vlgmr.msra.gmra.mrb[0].mxu1 %vm79_vm4, %v1937_v9  ;;  %v688_v2 = vld [vmem:[#allocation5 + $0x330] sm:$0xff] }
  0xb3   :  { %1553 = vmatpush3.bf16.msra.mxu1 %v1550_v0  ;;  %1687 = vmatprep.subr.bf16.mxu0 %v1686_v15  ;;  %v686_v0 = vld [vmem:[#allocation5 + $0x320] sm:$0xff]  ;;  %v1722_v13 = vpack.c.bf16 %v689_v7, %v688_v2 }
  0xb4   :  { %1555 = vmatprep.subr.bf16.mxu1 %v1554_v17  ;;  %v1718_v8 = vpack.c.bf16 %v687_v1, %v686_v0  ;;  %v372_v0 = vld [vmem:[#allocation5 + $0x1a8] sm:$0xff] }
  0xb5   :  { %v46_v29 = vpop.permute.xlu1 %45  ;;  %v672_v58 = vpop.permute.xlu0 %671 }
  0xb6   :  { %1689 = vmatpush3.bf16.msra.mxu0 %v1686_v15  ;;  %vm50_vm5 = vcmp.eq.s32.totalorder %v2006_v3, %v46_v29  ;;  %vm676_vm6 = vcmp.eq.s32.totalorder %v2006_v3, %v672_v58  ;;  %v690_v15 = vld [vmem:[#allocation5 + $0x340] sm:$0xff]  ;;  %v272_v29 = vld [vmem:[#allocation5 + $0x150] sm:$0xff] }
  0xb7   :  { %1557 = vmatpush3.bf16.msra.mxu1 %v1554_v17  ;;  %1691 = vmatprep.subr.bf16.mxu0 %v1690_v23  ;;  %v268_v17 = vld [vmem:[#allocation5 + $0x130] sm:$0xff]  ;;  %v1726_v19 = vpack.c.bf16 %v691_v16, %v690_v15  ;;  %v1762_v15 = vpack.c.bf16 %v798_v12, %v797_v11 }
  0xb8   :  { %1559 = vmatprep.subr.bf16.mxu1 %v1558_v24  ;;  %1270 = vmatprep.mubr.msk.f32.mxu1 %vm50_vm5, %v1937_v9  ;;  %v1594_v20 = vpack.c.bf16 %v269_v18, %v268_v17  ;;  %v799_v17 = vld [vmem:[#allocation5 + $0x3e0] sm:$0xff]  ;;  %v800_v18 = vld [vmem:[#allocation5 + $0x3e8] sm:$0xff] }
  0xb9   :  { %v49_v62 = vpop.permute.xlu1 %48  ;;  %v1766_v21 = vpack.c.bf16 %v800_v18, %v799_v17 }
  0xba   :  { %1693 = vmatpush3.bf16.msra.mxu0 %v1690_v23  ;;  %v252_v6 = vpop.permute.xlu0 %251  ;;  %vm51_vm8 = vcmp.eq.s32.totalorder %v2006_v3, %v49_v62  ;;  %v270_v23 = vld [vmem:[#allocation5 + $0x140] sm:$0xff]  ;;  %v794_v62 = vld [vmem:[#allocation5 + $0x3b8] sm:$0xff] }
  0xbb   :  { %1561 = vmatpush3.bf16.msra.mxu1 %v1558_v24  ;;  %1695 = vmatprep.subr.bf16.mxu0 %v1694_v30  ;;  %vm256_vm9 = vcmp.eq.s32.totalorder %v2006_v3, %v252_v6  ;;  %v271_v24 = vld [vmem:[#allocation5 + $0x148] sm:$0xff] }
  0xbc   :  { %1563 = vmatprep.subr.bf16.mxu1 %v1562_v31  ;;  %v1598_v26 = vpack.c.bf16 %v271_v24, %v270_v23  ;;  %v796_v6 = vld [vmem:[#allocation5 + $0x3c8] sm:$0xff]  ;;  %v801_v23 = vld [vmem:[#allocation5 + $0x3f0] sm:$0xff]  ;;  %v802_v24 = vld [vmem:[#allocation5 + $0x3f8] sm:$0xff] }
  0xbd   :  { %v1758_v2 = vpack.c.bf16 %v796_v6, %v795_v5  ;;  %v1770_v27 = vpack.c.bf16 %v802_v24, %v801_v23 }
  0xbe   :  { %1697 = vmatpush3.bf16.msra.mxu0 %v1694_v30  ;;  %v273_v30 = vld [vmem:[#allocation5 + $0x158] sm:$0xff] }
  0xbf   :  { %1565 = vmatpush3.bf16.msra.mxu1 %v1562_v31  ;;  %1699 = vmatprep.subr.bf16.mxu0 %v1698_v36  ;;  %v675_v31 = vpop.permute.xlu1 %674  ;;  %v1602_v33 = vpack.c.bf16 %v273_v30, %v272_v29  ;;  %v892_v29 = vld [vmem:[#allocation5 + $0x400] sm:$0xff]  ;;  %v893_v30 = vld [vmem:[#allocation5 + $0x408] sm:$0xff] }
  0xc0   :  { %1567 = vmatprep.subr.bf16.mxu1 %v1566_v37  ;;  %vm677_vm10 = vcmp.eq.s32.totalorder %v2006_v3, %v675_v31  ;;  %v381_v31 = vld [vmem:[#allocation5 + $0x1f0] sm:$0xff]  ;;  %v1774_v34 = vpack.c.bf16 %v893_v30, %v892_v29 }
  0xc2   :  { %1701 = vmatpush3.bf16.msra.mxu0 %v1698_v36  ;;  %v274_v36 = vld [vmem:[#allocation5 + $0x160] sm:$0xff] }
  0xc3   :  { %1569 = vmatpush3.bf16.msra.mxu1 %v1566_v37  ;;  %1703 = vmatprep.subr.bf16.mxu0 %v1702_v42  ;;  %v275_v37 = vld [vmem:[#allocation5 + $0x168] sm:$0xff]  ;;  %v777_v40 = vpop.permute.xlu1 %776 }
  0xc4   :  { %1571 = vmatprep.subr.bf16.mxu1 %v1570_v43  ;;  %v1606_v39 = vpack.c.bf16 %v275_v37, %v274_v36  ;;  %vm781_vm11 = vcmp.eq.s32.totalorder %v2006_v3, %v777_v40  ;;  %v894_v36 = vld [vmem:[#allocation5 + $0x410] sm:$0xff]  ;;  %v895_v37 = vld [vmem:[#allocation5 + $0x418] sm:$0xff] }
  0xc6   :  { %1705 = vmatpush3.bf16.msra.mxu0 %v1702_v42  ;;  %v788_v42 = vld [vmem:[#allocation5 + $0x388] sm:$0xff] }
  0xc7   :  { %1573 = vmatpush3.bf16.msra.mxu1 %v1570_v43  ;;  %1707 = vmatprep.subr.bf16.mxu0 %v1706_v48  ;;  %v276_v43 = vld [vmem:[#allocation5 + $0x170] sm:$0xff]  ;;  %v1742_v45 = vpack.c.bf16 %v788_v42, %v787_v41  ;;  %v896_v41 = vld [vmem:[#allocation5 + $0x420] sm:$0xff]  ;;  %v897_v42 = vld [vmem:[#allocation5 + $0x428] sm:$0xff] }
  0xc8   :  { %1575 = vmatprep.subr.bf16.mxu1 %v1574_v49  ;;  %v1610_v46 = vpack.c.bf16 %v277_v44, %v276_v43  ;;  %v255_v51 = vpop.permute.xlu1 %254  ;;  %v1782_v43 = vpack.c.bf16 %v897_v42, %v896_v41  ;;  %v898_v44 = vld [vmem:[#allocation5 + $0x430] sm:$0xff] }
  0xc9   :  { %vm257_vm12 = vcmp.eq.s32.totalorder %v2006_v3, %v255_v51  ;;  %v903_v51 = vld [vmem:[#allocation5 + $0x458] sm:$0xff] }
  0xca   :  { %1709 = vmatpush3.bf16.msra.mxu0 %v1706_v48  ;;  %v790_v48 = vld [vmem:[#allocation5 + $0x398] sm:$0xff] }
  0xcb   :  { %1577 = vmatpush3.bf16.msra.mxu1 %v1574_v49  ;;  %1711 = vmatprep.subr.bf16.mxu0 %v1710_v54  ;;  %v367_v49 = vld [vmem:[#allocation5 + $0x180] sm:$0xff]  ;;  %v1746_v52 = vpack.c.bf16 %v790_v48, %v789_v47  ;;  %v901_v48 = vld [vmem:[#allocation5 + $0x448] sm:$0xff] }
  0xcc   :  { %1579 = vmatprep.subr.bf16.mxu1 %v1578_v55  ;;  %v1614_v53 = vpack.c.bf16 %v368_v50, %v367_v49  ;;  %v900_v47 = vld [vmem:[#allocation5 + $0x440] sm:$0xff]  ;;  %v902_v50 = vld [vmem:[#allocation5 + $0x450] sm:$0xff] }
  0xcd   :  { %1411 = vmatmul.mubr.msk.f32.vlgmr.msra.gmra.mrb[0].mxu0 %vm572_vm7, %v1937_v9  ;;  %v357_v58 = vpop.permute.xlu1 %356  ;;  %v1790_v49 = vpack.c.bf16 %v901_v48, %v900_v47 }
  0xce   :  { %1713 = vmatpush3.bf16.msra.mxu0 %v1710_v54  ;;  %1445 = vmatprep.mubr.msk.f32.mxu0 %vm676_vm6, %v1937_v9  ;;  %v791_v54 = vld [vmem:[#allocation5 + $0x3a0] sm:$0xff]  ;;  %vm361_vm13 = vcmp.eq.s32.totalorder %v2006_v3, %v357_v58  ;;  %v1802_v58 = vpack.c.bf16 %v907_v57, %v906_v56 }
  0xcf   :  { %1581 = vmatpush3.bf16.msra.mxu1 %v1578_v55  ;;  %1715 = vmatprep.subr.bf16.mxu0 %v1714_v61  ;;  %v792_v55 = vld [vmem:[#allocation5 + $0x3a8] sm:$0xff] }
  0xd0   :  { %1583 = vmatprep.subr.bf16.mxu1 %v1582_v63  ;;  %v1750_v59 = vpack.c.bf16 %v792_v55, %v791_v54  ;;  %v905_v54 = vld [vmem:[#allocation5 + $0x468] sm:$0xff] }
  0xd2   :  { %1717 = vmatpush3.bf16.msra.mxu0 %v1714_v61  ;;  %1271 = vmatmul.mubr.msk.f32.vlgmr.msra.gmra.mrb[0].mxu1 %vm51_vm8, %v1937_v9  ;;  %v793_v61 = vld [vmem:[#allocation5 + $0x3b0] sm:$0xff] }
  0xd3   :  { %1585 = vmatpush3.bf16.msra.mxu1 %v1582_v63  ;;  %1719 = vmatprep.subr.bf16.mxu0 %v1718_v8  ;;  %v371_v63 = vld [vmem:[#allocation5 + $0x1a0] sm:$0xff]  ;;  %v1754_v1 = vpack.c.bf16 %v794_v62, %v793_v61 }
  0xd4   :  { %1587 = vmatprep.subr.bf16.mxu1 %v1586_v10  ;;  %1305 = vmatprep.mubr.msk.f32.mxu1 %vm256_vm9, %v1937_v9  ;;  %v1622_v4 = vpack.c.bf16 %v372_v0, %v371_v63 }
  0xd6   :  { %1721 = vmatpush3.bf16.msra.mxu0 %v1718_v8  ;;  %v373_v8 = vld [vmem:[#allocation5 + $0x1b0] sm:$0xff] }
  0xd7   :  { %1589 = vmatpush3.bf16.msra.mxu1 %v1586_v10  ;;  %1723 = vmatprep.subr.bf16.mxu0 %v1722_v13  ;;  %v374_v10 = vld [vmem:[#allocation5 + $0x1b8] sm:$0xff] }
  0xd8   :  { %1591 = vmatprep.subr.bf16.mxu1 %v1590_v14  ;;  %v1626_v7 = vpack.c.bf16 %v374_v10, %v373_v8 }
  0xda   :  { %1725 = vmatpush3.bf16.msra.mxu0 %v1722_v13  ;;  %v375_v13 = vld [vmem:[#allocation5 + $0x1c0] sm:$0xff] }
  0xdb   :  { %1593 = vmatpush3.bf16.msra.mxu1 %v1590_v14  ;;  %1727 = vmatprep.subr.bf16.mxu0 %v1726_v19  ;;  %v376_v14 = vld [vmem:[#allocation5 + $0x1c8] sm:$0xff] }
  0xdc   :  { %1595 = vmatprep.subr.bf16.mxu1 %v1594_v20  ;;  %v1630_v16 = vpack.c.bf16 %v376_v14, %v375_v13 }
  0xde   :  { %1729 = vmatpush3.bf16.msra.mxu0 %v1726_v19  ;;  %v377_v19 = vld [vmem:[#allocation5 + $0x1d0] sm:$0xff] }
  0xdf   :  { %1597 = vmatpush3.bf16.msra.mxu1 %v1594_v20  ;;  %1731 = vmatprep.subr.bf16.mxu0 %v1730_v25  ;;  %v378_v20 = vld [vmem:[#allocation5 + $0x1d8] sm:$0xff] }
  0xe0   :  { %1599 = vmatprep.subr.bf16.mxu1 %v1598_v26  ;;  %v1634_v22 = vpack.c.bf16 %v378_v20, %v377_v19 }
  0xe2   :  { %1733 = vmatpush3.bf16.msra.mxu0 %v1730_v25  ;;  %v379_v25 = vld [vmem:[#allocation5 + $0x1e0] sm:$0xff] }
  0xe3   :  { %1601 = vmatpush3.bf16.msra.mxu1 %v1598_v26  ;;  %1735 = vmatprep.subr.bf16.mxu0 %v1734_v32  ;;  %v380_v26 = vld [vmem:[#allocation5 + $0x1e8] sm:$0xff] }
  0xe4   :  { %1603 = vmatprep.subr.bf16.mxu1 %v1602_v33  ;;  %v1638_v28 = vpack.c.bf16 %v380_v26, %v379_v25 }
  0xe6   :  { %1737 = vmatpush3.bf16.msra.mxu0 %v1734_v32  ;;  %v382_v32 = vld [vmem:[#allocation5 + $0x1f8] sm:$0xff] }
  0xe7   :  { %1605 = vmatpush3.bf16.msra.mxu1 %v1602_v33  ;;  %1739 = vmatprep.subr.bf16.mxu0 %v1738_v38  ;;  %v780_v33 = vpop.permute.xlu0 %779  ;;  %v1642_v35 = vpack.c.bf16 %v382_v32, %v381_v31 }
  0xe8   :  { %1607 = vmatprep.subr.bf16.mxu1 %v1606_v39  ;;  %vm782_vm14 = vcmp.eq.s32.totalorder %v2006_v3, %v780_v33 }
  0xea   :  { %1741 = vmatpush3.bf16.msra.mxu0 %v1738_v38  ;;  %v882_v38 = vpop.permute.xlu1 %881 }
  0xeb   :  { %1609 = vmatpush3.bf16.msra.mxu1 %v1606_v39  ;;  %1743 = vmatprep.subr.bf16.mxu0 %v1742_v45  ;;  %v1778_v39 = vpack.c.bf16 %v895_v37, %v894_v36  ;;  %vm886_vm15 = vcmp.eq.s32.totalorder %v2006_v3, %v882_v38  ;;  %v360_v40 = vpop.permute.xlu0 %359 }
  0xec   :  { %1611 = vmatprep.subr.bf16.mxu1 %v1610_v46  ;;  %vm362_vm0 = vcmp.eq.s32.totalorder %v2006_v3, %v360_v40 }
  0xed   :  { %1446 = vmatmul.mubr.msk.f32.vlgmr.msra.gmra.mrb[0].mxu0 %vm677_vm10, %v1937_v9 }
  0xee   :  { %1745 = vmatpush3.bf16.msra.mxu0 %v1742_v45  ;;  %1480 = vmatprep.mubr.msk.f32.mxu0 %vm781_vm11, %v1937_v9  ;;  %v899_v45 = vld [vmem:[#allocation5 + $0x438] sm:$0xff] }
  0xef   :  { %1613 = vmatpush3.bf16.msra.mxu1 %v1610_v46  ;;  %1747 = vmatprep.subr.bf16.mxu0 %v1746_v52  ;;  %v1786_v46 = vpack.c.bf16 %v899_v45, %v898_v44 }
  0xf0   :  { %1615 = vmatprep.subr.bf16.mxu1 %v1614_v53 }
  0xf2   :  { %1749 = vmatpush3.bf16.msra.mxu0 %v1746_v52  ;;  %1306 = vmatmul.mubr.msk.f32.vlgmr.msra.gmra.mrb[0].mxu1 %vm257_vm12, %v1937_v9  ;;  %v1794_v52 = vpack.c.bf16 %v903_v51, %v902_v50 }
  0xf3   :  { %1617 = vmatpush3.bf16.msra.mxu1 %v1614_v53  ;;  %1751 = vmatprep.subr.bf16.mxu0 %v1750_v59  ;;  %v904_v53 = vld [vmem:[#allocation5 + $0x460] sm:$0xff] }
  0xf4   :  { %1619 = vmatprep.subr.bf16.mxu1 %v1618_v60  ;;  %1340 = vmatprep.mubr.msk.f32.mxu1 %vm361_vm13, %v1937_v9  ;;  %v1798_v55 = vpack.c.bf16 %v905_v54, %v904_v53 }
  0xf6   :  { %1753 = vmatpush3.bf16.msra.mxu0 %v1750_v59  ;;  %v885_v59 = vpop.permute.xlu1 %884 }
  0xf7   :  { %1621 = vmatpush3.bf16.msra.mxu1 %v1618_v60  ;;  %1755 = vmatprep.subr.bf16.mxu0 %v1754_v1  ;;  %vm887_vm1 = vcmp.eq.s32.totalorder %v2006_v3, %v885_v59 }
  0xf8   :  { %1623 = vmatprep.subr.bf16.mxu1 %v1622_v4 }
  0xfa   :  { %1757 = vmatpush3.bf16.msra.mxu0 %v1754_v1 }
  0xfb   :  { %1625 = vmatpush3.bf16.msra.mxu1 %v1622_v4  ;;  %1759 = vmatprep.subr.bf16.mxu0 %v1758_v2 }
  0xfc   :  { %1627 = vmatprep.subr.bf16.mxu1 %v1626_v7 }
  0xfe   :  { %1761 = vmatpush3.bf16.msra.mxu0 %v1758_v2 }
  0xff   :  { %1629 = vmatpush3.bf16.msra.mxu1 %v1626_v7  ;;  %1763 = vmatprep.subr.bf16.mxu0 %v1762_v15 }
 0x100   :  { %1631 = vmatprep.subr.bf16.mxu1 %v1630_v16 }
 0x102   :  { %1765 = vmatpush3.bf16.msra.mxu0 %v1762_v15 }
 0x103   :  { %1633 = vmatpush3.bf16.msra.mxu1 %v1630_v16  ;;  %1767 = vmatprep.subr.bf16.mxu0 %v1766_v21 }
 0x104   :  { %1635 = vmatprep.subr.bf16.mxu1 %v1634_v22 }
 0x106   :  { %1769 = vmatpush3.bf16.msra.mxu0 %v1766_v21 }
 0x107   :  { %1637 = vmatpush3.bf16.msra.mxu1 %v1634_v22  ;;  %1771 = vmatprep.subr.bf16.mxu0 %v1770_v27 }
 0x108   :  { %1639 = vmatprep.subr.bf16.mxu1 %v1638_v28 }
 0x10a   :  { %1773 = vmatpush3.bf16.msra.mxu0 %v1770_v27 }
 0x10b   :  { %1641 = vmatpush3.bf16.msra.mxu1 %v1638_v28  ;;  %1775 = vmatprep.subr.bf16.mxu0 %v1774_v34 }
 0x10c   :  { %1643 = vmatprep.subr.bf16.mxu1 %v1642_v35 }
 0x10d   :  { %1481 = vmatmul.mubr.msk.f32.vlgmr.msra.gmra.mrb[0].mxu0 %vm782_vm14, %v1937_v9 }
 0x10e   :  { %1777 = vmatpush3.bf16.msra.mxu0 %v1774_v34  ;;  %1515 = vmatprep.mubr.msk.f32.mxu0 %vm886_vm15, %v1937_v9 }
 0x10f   :  { %1645 = vmatpush3.bf16.msra.mxu1 %v1642_v35  ;;  %1779 = vmatprep.subr.bf16.mxu0 %v1778_v39 }
 0x112   :  { %1341 = vmatmul.mubr.msk.f32.vlgmr.msra.gmra.mrb[0].mxu1 %vm362_vm0, %v1937_v9  ;;  %1781 = vmatpush3.bf16.msra.mxu0 %v1778_v39 }
 0x113   :  { %1783 = vmatprep.subr.bf16.mxu0 %v1782_v43 }
 0x116   :  { %1785 = vmatpush3.bf16.msra.mxu0 %v1782_v43 }
 0x117   :  { %1787 = vmatprep.subr.bf16.mxu0 %v1786_v46 }
 0x11a   :  { %1789 = vmatpush3.bf16.msra.mxu0 %v1786_v46 }
 0x11b   :  { %1791 = vmatprep.subr.bf16.mxu0 %v1790_v49 }
 0x11e   :  { %1793 = vmatpush3.bf16.msra.mxu0 %v1790_v49 }
 0x11f   :  { %1795 = vmatprep.subr.bf16.mxu0 %v1794_v52 }
 0x122   :  { %1797 = vmatpush3.bf16.msra.mxu0 %v1794_v52 }
 0x123   :  { %1799 = vmatprep.subr.bf16.mxu0 %v1798_v55 }
 0x126   :  { %1801 = vmatpush3.bf16.msra.mxu0 %v1798_v55 }
 0x127   :  { %1803 = vmatprep.subr.bf16.mxu0 %v1802_v58 }
 0x12a   :  { %1805 = vmatpush3.bf16.msra.mxu0 %v1802_v58 }
 0x12d   :  { %1516 = vmatmul.mubr.msk.f32.vlgmr.msra.gmra.mrb[0].mxu0 %vm887_vm1, %v1937_v9 }
 0x1e5   :  { %v1342_v60 = vpop.f32.mrb[0].mxu1 }
 0x1e6   :  { %v449_v61 = vpop.f32.mrb[1].mxu1 }
 0x200   :  { %v1517_v62 = vpop.f32.mrb[0].mxu0 }
 0x201   :  { %v1806_v63 = vadd.f32 %v1517_v62, %v1342_v60  ;;  %v974_v0 = vpop.f32.mrb[1].mxu0 }
 0x202   :  { %v1807_v1 = vadd.f32 %v974_v0, %v449_v61 }
 0x203   :  { %986 = vst [vmem:[#allocation7 + $0x8] sm:$0xff] %v1806_v63 }
 0x204   :  { %985 = vst [vmem:[#allocation7] sm:$0xff] %v1807_v1 }
 0x205   :  { %1907 = shalt.err (!%p1904_p6)
}
 0x206   :  { %s1908_s10 = scalar_lea.hbm %s2064_s2, 256 }
 0x207   :  { %p1909_p7 = scmp.ne.s32.totalorder %s2064_s2, %s1908_s10  ;;  %p1912_p8 = scmp.lt.u32.totalorder %s1908_s10, %s2064_s2 }
 0x209   :  { %p1914_p9 = pnand %p1912_p8, %p1909_p7 }
 0x20b   :  { %1917 = shalt.err (!%p1914_p9)
}
 0x20c   :  { %998 = dma.vmem_to_hbm [thread:$0]  %s993_s6, 256, %s2064_s2, [#allocation4], %s1925_s19, %s1925_s19, %s1926_s20  }
 0x20d   :  { %1922 = dma.done.wait [#allocation4], 256  }
 0x20e   :  { %1923 = vsyncadd [#allocation4], 4294967040 }
 0x20f   :  { %1002 = vsyncpa [#allocation3], 1 }
 0x210   :  { %1003 = vsyncpa [#allocation6], 1 }
 0x211   :  { %1004 = vsyncpa [#allocation4], 1 }

</bundles_post_ra>
